<compile_context>
chip_gen: v6e
topology: v6e:2x2x1
jax: 0.10.0
libtpu: 0.0.40
codegen_flags: <defaults>
</compile_context>

<pallas_src>
import jax
import jax.numpy as jnp
from jax import lax
from jax.experimental import pallas as pl
from jax.experimental.pallas import tpu as pltpu


_LANE = 128
_MAX_BLOCK_B = 16384      # target >= ~1 MiB x-tiles; grid becomes step-overhead-free


def _round_up(a, b):
    return (a + b - 1) // b * b


def _discriminator_kernel(x_ref, w1_ref, b1_ref, w2_ref, b2_ref, w3_ref, b3_ref,
                          o_ref):
    """Fused 3-layer MLP on one (block_b, D) batch tile.

    All matmuls contract on the feature axis, so every activation is laid out
    as (features, block_b): features on sublanes, batch on the lane axis, and
    the output tile (1, block_b) is lane-dense.
    """
    x = x_ref[...].astype(jnp.bfloat16)                            # (Bt, D)

    # Layer 1: h1 = W1 @ x^T  (contract D with D)   -> (H1, Bt) f32
    h1 = lax.dot_general(w1_ref[...], x, (((1,), (1,)), ((), ())),
                         preferred_element_type=jnp.float32) + b1_ref[...]
    h1 = jnp.where(h1 > 0, h1, 0.2 * h1)                            # LeakyReLU(0.2)

    # Layer 2: Linear + LeakyReLU(0.2)              -> (H2, Bt) f32
    h2 = jnp.dot(w2_ref[...], h1.astype(w2_ref.dtype),
                 preferred_element_type=jnp.float32) + b2_ref[...]
    h2 = jnp.where(h2 > 0, h2, 0.2 * h2)

    # Layer 3: Linear + Sigmoid                     -> (1, Bt) f32
    h3 = jnp.dot(w3_ref[...], h2.astype(w3_ref.dtype),
                 preferred_element_type=jnp.float32) + b3_ref[...]
    o_ref[...] = jax.nn.sigmoid(h3).astype(o_ref.dtype)


def _num_tensorcores():
    """2 on v7x-class parts (megacore-sharded grid axis), 1 on v5e/v6e."""
    try:
        kind = jax.devices()[0].device_kind.lower()
        if "v7" in kind:
            return 2
    except Exception:
        pass
    return 1


def _vmem_budget_and_limit():
    """(per-step tile budget, vmem_limit_bytes) derived from the chip's VMEM."""
    try:
        vmem_cap = int(pltpu.get_tpu_info().vmem_capacity_bytes)
    except Exception:
        vmem_cap = 64 << 20            # conservative: v7x per-TensorCore VMEM
    limit = max(32 << 20, min(vmem_cap - (16 << 20), 96 << 20))
    return limit // 2, limit


def _choose_block_b(B, D, H1, H2, n_cores, budget_bytes):
    """Largest lane-aligned batch tile that fits the VMEM budget."""
    d_lanes = _round_up(D, _LANE)                    # x tile is lane-padded in VMEM
    per_row = (2 * 4 + 2) * d_lanes                  # f32 x (double-buffered) + bf16 cast
    per_row += 6 * _round_up(H1, 8) + 6 * _round_up(H2, 8)   # h1/h2 f32 + bf16 recasts
    per_row += 4 * 8 + 2 * 4 * 8                     # h3 + double-buffered out tile
    cap = budget_bytes // max(per_row, 1)
    cap = min(cap, _MAX_BLOCK_B, _round_up(B, _LANE))
    if n_cores > 1:
        # Keep >= n_cores grid steps so every TensorCore gets work (v7x only;
        # on single-TC chips extra steps are pure overhead).
        cap = min(cap, _round_up(pl.cdiv(B, n_cores), _LANE))
    return max(_LANE, cap // _LANE * _LANE)


@jax.jit
def discriminator_forward(x, params):
    """Fused discriminator forward: x (B, D) f32 -> (B, 1) f32."""
    w1, b1, w2, b2, w3, b3 = params          # PyTorch-native (out, in) weights
    B, D = x.shape
    H1, H2 = w1.shape[0], w2.shape[0]

    budget, vmem_limit = _vmem_budget_and_limit()
    block_b = _choose_block_b(B, D, H1, H2, _num_tensorcores(), budget)
    grid = (pl.cdiv(B, block_b),)            # ragged last tile handled by masking

    # Tiny parameter prep only (weights are O(KB)); x is fed completely untouched.
    w1b = w1.astype(jnp.bfloat16)                                  # (H1, D)
    w2b = w2.astype(jnp.bfloat16)                                  # (H2, H1)
    w3b = w3.astype(jnp.bfloat16)                                  # (1, H2)
    b1c = b1.reshape(H1, 1).astype(jnp.float32)
    b2c = b2.reshape(H2, 1).astype(jnp.float32)
    b3c = b3.reshape(1, 1).astype(jnp.float32)

    in_specs = [
        # x tile in its natural (batch, feature) layout — one f32 HBM read.
        # TODO(synk): add pipeline_mode=pl.Buffered(3) here if a profile shows
        # exposed DMA between the (almost compute-free) grid steps.
        pl.BlockSpec((block_b, D), lambda i: (i, 0)),
        pl.BlockSpec((H1, D), lambda i: (0, 0)),        # W1 (resident, no re-DMA)
        pl.BlockSpec((H1, 1), lambda i: (0, 0)),        # b1
        pl.BlockSpec((H2, H1), lambda i: (0, 0)),       # W2
        pl.BlockSpec((H2, 1), lambda i: (0, 0)),        # b2
        pl.BlockSpec((1, H2), lambda i: (0, 0)),        # W3
        pl.BlockSpec((1, 1), lambda i: (0, 0)),         # b3
    ]
    out_specs = pl.BlockSpec((1, block_b), lambda i: (0, i))       # lane-dense output

    cost = pl.CostEstimate(
        flops=2 * B * (D * H1 + H1 * H2 + H2),
        transcendentals=B,                               # sigmoid
        bytes_accessed=4 * B * D + 4 * B
        + 2 * (H1 * D + H2 * H1 + H2) + 4 * (H1 + H2 + 1),
    )

    out_p = pl.pallas_call(
        _discriminator_kernel,
        out_shape=jax.ShapeDtypeStruct((1, B), jnp.float32),
        grid_spec=pltpu.PrefetchScalarGridSpec(
            num_scalar_prefetch=0,
            grid=grid,
            in_specs=in_specs,
            out_specs=out_specs,
        ),
        compiler_params=pltpu.CompilerParams(
            dimension_semantics=("parallel",),
            vmem_limit_bytes=vmem_limit,
        ),
        cost_estimate=cost,
    )(x, w1b, b1c, w2b, b2c, w3b, b3c)

    # (1, B) row-major -> (B, 1)
    return out_p.reshape(B, 1)


def init_discriminator_params(key, input_dim):
    """Deterministic init matching nn.Linear layer shapes (PyTorch (out, in))."""
    h1 = 2 * input_dim // 3
    h2 = input_dim // 3
    ks = jax.random.split(key, 6)

    def uniform(k, shape, fan_in):
        bound = 1.0 / jnp.sqrt(jnp.float32(fan_in))
        return jax.random.uniform(k, shape, jnp.float32, -bound, bound)

    w1 = uniform(ks[0], (h1, input_dim), input_dim)
    b1 = uniform(ks[1], (h1,), input_dim)
    w2 = uniform(ks[2], (h2, h1), h1)
    b2 = uniform(ks[3], (h2,), h1)
    w3 = uniform(ks[4], (1, h2), h2)
    b3 = uniform(ks[5], (1,), h2)
    return (w1, b1, w2, b2, w3, b3)


def reference_forward(x, params):
    """Plain-JAX f32 reference of the same forward pass (for verification)."""
    w1, b1, w2, b2, w3, b3 = params
    h = x @ w1.T + b1
    h = jnp.where(h > 0, h, 0.2 * h)
    h = h @ w2.T + b2
    h = jnp.where(h > 0, h, 0.2 * h)
    h = h @ w3.T + b3
    return jax.nn.sigmoid(h)


if __name__ == "__main__":
    key = jax.random.PRNGKey(0)
    k_x, k_p = jax.random.split(key)

    input_dim = 48          # -> hidden1 = 32, hidden2 = 16, out = 1
    batch = 256

    x = jax.random.normal(k_x, (batch, input_dim), dtype=jnp.float32)
    params = init_discriminator_params(k_p, input_dim)

    out = discriminator_forward(x, params)
    out = jax.block_until_ready(out)

    ref = reference_forward(x, params)
    assert out.shape == (batch, 1), out.shape
    max_err = jnp.max(jnp.abs(out - ref))
    # bf16 matmul operands / f32 accumulation vs. pure-f32 reference.
    assert jnp.allclose(out, ref, atol=2e-2, rtol=2e-2), (
        f"mismatch: max abs err {max_err}")

    print("KERNEL_OK")
</pallas_src>

<mosaic_0001>
module attributes {stable_mosaic.version = 11 : i64} {
  func.func @_discriminator_kernel(%arg0: i32, %arg1: memref<256x48xf32, #tpu.memory_space<vmem>>, %arg2: memref<32x48xbf16, #tpu.memory_space<vmem>>, %arg3: memref<32x1xf32, #tpu.memory_space<vmem>>, %arg4: memref<16x32xbf16, #tpu.memory_space<vmem>>, %arg5: memref<16x1xf32, #tpu.memory_space<vmem>>, %arg6: memref<1x16xbf16, #tpu.memory_space<vmem>>, %arg7: memref<1x1xf32, #tpu.memory_space<vmem>>, %arg8: memref<1x256xf32, #tpu.memory_space<vmem>>) attributes {dimension_semantics = [#tpu.dimension_semantics<parallel>], iteration_bounds = array<i64: 1>, scalar_prefetch = 0 : i64, scratch_operands = 0 : i64, tpu.core_type = #tpu.core_type<tc>, window_params = [{transform_indices = @transform_0, window_bounds = array<i64: 256, 48>}, {pipeline_mode = #tpu.pipeline_mode<synchronous>, transform_indices = @transform_1, window_bounds = array<i64: 32, 48>}, {pipeline_mode = #tpu.pipeline_mode<synchronous>, transform_indices = @transform_2, window_bounds = array<i64: 32, 1>}, {pipeline_mode = #tpu.pipeline_mode<synchronous>, transform_indices = @transform_3, window_bounds = array<i64: 16, 32>}, {pipeline_mode = #tpu.pipeline_mode<synchronous>, transform_indices = @transform_4, window_bounds = array<i64: 16, 1>}, {pipeline_mode = #tpu.pipeline_mode<synchronous>, transform_indices = @transform_5, window_bounds = array<i64: 1, 16>}, {pipeline_mode = #tpu.pipeline_mode<synchronous>, transform_indices = @transform_6, window_bounds = array<i64: 1, 1>}, {transform_indices = @transform_7, window_bounds = array<i64: 1, 256>}]} {
    %c0 = arith.constant 0 : index
    %c0_0 = arith.constant 0 : index
    %0 = vector.load %arg1[%c0, %c0_0] : memref<256x48xf32, #tpu.memory_space<vmem>>, vector<256x48xf32>
    %1 = arith.truncf %0 : vector<256x48xf32> to vector<256x48xbf16>
    %c0_1 = arith.constant 0 : index
    %c0_2 = arith.constant 0 : index
    %2 = vector.load %arg2[%c0_1, %c0_2] : memref<32x48xbf16, #tpu.memory_space<vmem>>, vector<32x48xbf16>
    %cst = arith.constant dense<0.000000e+00> : vector<32x256xf32>
    %3 = tpu.matmul %2, %1, %cst {dimension_numbers = #tpu.dot_dimension_numbers<[1], [1], [0], [0], [0, 0, 1, 0], [], []>} : vector<32x48xbf16>, vector<256x48xbf16>, vector<32x256xf32> -> vector<32x256xf32>
    %c0_3 = arith.constant 0 : index
    %c0_4 = arith.constant 0 : index
    %4 = vector.load %arg3[%c0_3, %c0_4] : memref<32x1xf32, #tpu.memory_space<vmem>>, vector<32x1xf32>
    %5 = vector.broadcast %4 : vector<32x1xf32> to vector<32x256xf32>
    %6 = arith.addf %3, %5 : vector<32x256xf32>
    %cst_5 = arith.constant 0.000000e+00 : f32
    %7 = vector.broadcast %cst_5 : f32 to vector<32x256xf32>
    %8 = arith.cmpf ogt, %6, %7 : vector<32x256xf32>
    %cst_6 = arith.constant 2.000000e-01 : f32
    %9 = vector.broadcast %cst_6 : f32 to vector<32x256xf32>
    %10 = arith.mulf %9, %6 : vector<32x256xf32>
    %11 = arith.select %8, %6, %10 : vector<32x256xi1>, vector<32x256xf32>
    %c0_7 = arith.constant 0 : index
    %c0_8 = arith.constant 0 : index
    %12 = vector.load %arg4[%c0_7, %c0_8] : memref<16x32xbf16, #tpu.memory_space<vmem>>, vector<16x32xbf16>
    %13 = arith.truncf %11 : vector<32x256xf32> to vector<32x256xbf16>
    %cst_9 = arith.constant dense<0.000000e+00> : vector<16x256xf32>
    %14 = tpu.matmul %12, %13, %cst_9 {dimension_numbers = #tpu.dot_dimension_numbers<[1], [0], [0], [1], [0, 0, 1, 1], [], []>} : vector<16x32xbf16>, vector<32x256xbf16>, vector<16x256xf32> -> vector<16x256xf32>
    %c0_10 = arith.constant 0 : index
    %c0_11 = arith.constant 0 : index
    %15 = vector.load %arg5[%c0_10, %c0_11] : memref<16x1xf32, #tpu.memory_space<vmem>>, vector<16x1xf32>
    %16 = vector.broadcast %15 : vector<16x1xf32> to vector<16x256xf32>
    %17 = arith.addf %14, %16 : vector<16x256xf32>
    %cst_12 = arith.constant 0.000000e+00 : f32
    %18 = vector.broadcast %cst_12 : f32 to vector<16x256xf32>
    %19 = arith.cmpf ogt, %17, %18 : vector<16x256xf32>
    %cst_13 = arith.constant 2.000000e-01 : f32
    %20 = vector.broadcast %cst_13 : f32 to vector<16x256xf32>
    %21 = arith.mulf %20, %17 : vector<16x256xf32>
    %22 = arith.select %19, %17, %21 : vector<16x256xi1>, vector<16x256xf32>
    %c0_14 = arith.constant 0 : index
    %c0_15 = arith.constant 0 : index
    %23 = vector.load %arg6[%c0_14, %c0_15] : memref<1x16xbf16, #tpu.memory_space<vmem>>, vector<1x16xbf16>
    %24 = arith.truncf %22 : vector<16x256xf32> to vector<16x256xbf16>
    %cst_16 = arith.constant dense<0.000000e+00> : vector<1x256xf32>
    %25 = tpu.matmul %23, %24, %cst_16 {dimension_numbers = #tpu.dot_dimension_numbers<[1], [0], [0], [1], [0, 0, 1, 1], [], []>} : vector<1x16xbf16>, vector<16x256xbf16>, vector<1x256xf32> -> vector<1x256xf32>
    %c0_17 = arith.constant 0 : index
    %c0_18 = arith.constant 0 : index
    %26 = vector.load %arg7[%c0_17, %c0_18] : memref<1x1xf32, #tpu.memory_space<vmem>>, vector<1x1xf32>
    %27 = vector.broadcast %26 : vector<1x1xf32> to vector<1x256xf32>
    %28 = arith.addf %25, %27 : vector<1x256xf32>
    %29 = arith.negf %28 : vector<1x256xf32>
    %30 = math.exp %29 : vector<1x256xf32>
    %cst_19 = arith.constant 1.000000e+00 : f32
    %31 = vector.broadcast %cst_19 : f32 to vector<1x256xf32>
    %32 = arith.addf %31, %30 : vector<1x256xf32>
    %33 = arith.divf %31, %32 : vector<1x256xf32>
    %c0_20 = arith.constant 0 : index
    %c0_21 = arith.constant 0 : index
    %34 = vector.load %arg8[%c0_20, %c0_21] : memref<1x256xf32, #tpu.memory_space<vmem>>, vector<1x256xf32>
    tpu.vector_store %arg8[%c0_20, %c0_21], %33 {strides = array<i32>} : memref<1x256xf32, #tpu.memory_space<vmem>>, vector<1x256xf32>,
    return
  }
  func.func @transform_0(%arg0: i32) -> (i32, i32) {
    %c0_i32 = arith.constant 0 : i32
    %c0_i32_0 = arith.constant 0 : i32
    return %arg0, %c0_i32 : i32, i32
  }
  func.func @transform_1(%arg0: i32) -> (i32, i32) {
    %c0_i32 = arith.constant 0 : i32
    %c0_i32_0 = arith.constant 0 : i32
    %c0_i32_1 = arith.constant 0 : i32
    return %c0_i32, %c0_i32_0 : i32, i32
  }
  func.func @transform_2(%arg0: i32) -> (i32, i32) {
    %c0_i32 = arith.constant 0 : i32
    %c0_i32_0 = arith.constant 0 : i32
    %c0_i32_1 = arith.constant 0 : i32
    return %c0_i32, %c0_i32_0 : i32, i32
  }
  func.func @transform_3(%arg0: i32) -> (i32, i32) {
    %c0_i32 = arith.constant 0 : i32
    %c0_i32_0 = arith.constant 0 : i32
    %c0_i32_1 = arith.constant 0 : i32
    return %c0_i32, %c0_i32_0 : i32, i32
  }
  func.func @transform_4(%arg0: i32) -> (i32, i32) {
    %c0_i32 = arith.constant 0 : i32
    %c0_i32_0 = arith.constant 0 : i32
    %c0_i32_1 = arith.constant 0 : i32
    return %c0_i32, %c0_i32_0 : i32, i32
  }
  func.func @transform_5(%arg0: i32) -> (i32, i32) {
    %c0_i32 = arith.constant 0 : i32
    %c0_i32_0 = arith.constant 0 : i32
    %c0_i32_1 = arith.constant 0 : i32
    return %c0_i32, %c0_i32_0 : i32, i32
  }
  func.func @transform_6(%arg0: i32) -> (i32, i32) {
    %c0_i32 = arith.constant 0 : i32
    %c0_i32_0 = arith.constant 0 : i32
    %c0_i32_1 = arith.constant 0 : i32
    return %c0_i32, %c0_i32_0 : i32, i32
  }
  func.func @transform_7(%arg0: i32) -> (i32, i32) {
    %c0_i32 = arith.constant 0 : i32
    %c0_i32_0 = arith.constant 0 : i32
    return %c0_i32, %arg0 : i32, i32
  }
}

</mosaic_0001>

<bundles_post_ra>
// kernel: discriminator_forward.1
= control target key start
LH: loop header
LB: loop body
LE: loop exit
PB: predicated region body
PF: predicated region fallthrough
CT: control target
= control target key end

     0   :  { %s715_s0 = inlined_call_operand.vmem [shape: f32[256,48], index: 0, kind: input, shape index: {}]   ;;  %s716_s1 = inlined_call_operand.vmem [shape: bf16[32,48], index: 1, kind: input, shape index: {}]   ;;  %s717_s2 = inlined_call_operand.vmem [shape: f32[32,1], index: 2, kind: input, shape index: {}]   ;;  %s718_s3 = inlined_call_operand.vmem [shape: bf16[16,32], index: 3, kind: input, shape index: {}]   ;;  %s719_s4 = inlined_call_operand.vmem [shape: f32[16,1], index: 4, kind: input, shape index: {}]   ;;  %s720_s5 = inlined_call_operand.vmem [shape: bf16[1,16], index: 5, kind: input, shape index: {}]   ;;  %s721_s6 = inlined_call_operand.<no memory space> [shape: f32[1,1], index: 6, kind: input, shape index: {}]   ;;  %s722_s7 = inlined_call_operand.hbm [shape: f32[1,256], index: 7, kind: output, shape index: {}]  }
   0x1   :  { %v12_v0 = vstv %s721_s6 }
   0x2   :  { %13 = vst [vmem:[#allocation2] sm:$0x1] %v12_v0 }
   0x3   :  { %v60_v1 = vld [vmem:[%s715_s0 + $0xf0] sm:$0xff]  ;;  %v61_v2 = vld [vmem:[%s715_s0 + $0xf8] sm:$0xff]  ;;  %vm116_vm0 = vcmask 392192   ;;  %v58_v6 = vld [vmem:[%s715_s0 + $0xe0] sm:$0xff]  ;;  %v512_v8 = vmov 0  }
   0x4   :  { %v44_v3 = vld [vmem:[%s715_s0 + $0x70] sm:$0xff]  ;;  %v77_v4 = vpack.c.bf16 %v61_v2, %v60_v1  ;;  %v45_v5 = vld [vmem:[%s715_s0 + $0x78] sm:$0xff]  ;;  %v59_v7 = vld [vmem:[%s715_s0 + $0xe8] sm:$0xff]  ;;  %477 = vset.pattern.permute.xlu0 %v512_v8  ;;  %478 = vset.pattern.permute.xlu1 %v512_v8 }
   0x5   :  { %v69_v9 = vpack.c.bf16 %v45_v5, %v44_v3  ;;  %v76_v10 = vpack.c.bf16 %v59_v7, %v58_v6  ;;  %307 = vmatprep.mubr.bf16.mxu1 %v512_v8  ;;  %v42_v11 = vld [vmem:[%s715_s0 + $0x60] sm:$0xff]  ;;  %v43_v12 = vld [vmem:[%s715_s0 + $0x68] sm:$0xff]  ;;  %v56_v15 = vld [vmem:[%s715_s0 + $0xd0] sm:$0xff] }
   0x6   :  { %466 = vmatprep.subr.msk.bf16.mxu0 %vm116_vm0, %v77_v4  ;;  %v68_v14 = vpack.c.bf16 %v43_v12, %v42_v11  ;;  %v57_v16 = vld [vmem:[%s715_s0 + $0xd8] sm:$0xff]  ;;  %v40_v19 = vld [vmem:[%s715_s0 + $0x50] sm:$0xff]  ;;  %v604_v21 = vld [vmem:[%s716_s1] sm:$0xff]  }
   0x7   :  { %v145_v13 = vsel %vm116_vm0, %v69_v9, 0  ;;  %v75_v18 = vpack.c.bf16 %v57_v16, %v56_v15  ;;  %v41_v20 = vld [vmem:[%s715_s0 + $0x58] sm:$0xff]  ;;  %v84_v22 = vld [vmem:[%s717_s2 + $0x10] sm:$0xff]  ;;  %462 = vmatprep.mubr.msk.bf16.mxu0 %vm116_vm0, %v604_v21  ;;  %v82_v23 = vld [vmem:[%s717_s2] sm:$0xff] }
   0x8   :  { %447 = vmatpush3.bf16.xpose.msra.mxu0 %v145_v13  ;;  %v142_v17 = vsel %vm116_vm0, %v68_v14, 0  ;;  %v67_v24 = vpack.c.bf16 %v41_v20, %v40_v19  ;;  %v54_v25 = vld [vmem:[%s715_s0 + $0xc0] sm:$0xff]  ;;  %v55_v26 = vld [vmem:[%s715_s0 + $0xc8] sm:$0xff]  ;;  %98 = vperm.xlu0 %477, %v84_v22   ;;  %v85_v27 = vld [vmem:[%s717_s2 + $0x18] sm:$0xff] }
   0x9   :  { %467 = vmatprep.subr.msk.bf16.mxu0 %vm116_vm0, %v76_v10  ;;  %88 = vperm.xlu1 %478, %v82_v23  }
  0x10   :  { %449 = vmatpush3.bf16.xpose.msra.mxu0 %v142_v17 }
  0x11   :  { %468 = vmatprep.subr.msk.bf16.mxu0 %vm116_vm0, %v75_v18 }
  0x12   :  { %14 = vsyncpa [#allocation4], 0  ;;  %v83_v28 = vld [vmem:[%s717_s2 + $0x8] sm:$0xff]  ;;  %v139_v29 = vsel %vm116_vm0, %v67_v24, 0  ;;  %v74_v30 = vpack.c.bf16 %v55_v26, %v54_v25  ;;  %103 = vperm.xlu0 %477, %v85_v27   ;;  %v38_v31 = vld [vmem:[%s715_s0 + $0x40] sm:$0xff]  ;;  %vm271_vm9 = vcmask 261120  }
  0x13   :  { %v39_v32 = vld [vmem:[%s715_s0 + $0x48] sm:$0xff]  ;;  %93 = vperm.xlu1 %478, %v83_v28   ;;  %v254_v33 = vld [vmem:[%s719_s4] sm:$0xff]  ;;  %v52_v36 = vld [vmem:[%s715_s0 + $0xb0] sm:$0xff]  ;;  %vm343_vm14 = vcmask 130048  }
  0x14   :  { %v255_v34 = vld [vmem:[%s719_s4 + $0x8] sm:$0xff]  ;;  %v66_v35 = vpack.c.bf16 %v39_v32, %v38_v31  ;;  %v53_v37 = vld [vmem:[%s715_s0 + $0xb8] sm:$0xff]  ;;  %v333_v38 = vld [vmem:[#allocation2] sm:$0x1] }
  0x15   :  { %v73_v40 = vpack.c.bf16 %v53_v37, %v52_v36  ;;  %v36_v41 = vld [vmem:[%s715_s0 + $0x30] sm:$0xff]  ;;  %v37_v42 = vld [vmem:[%s715_s0 + $0x38] sm:$0xff]  ;;  %v50_v44 = vld [vmem:[%s715_s0 + $0xa0] sm:$0xff] }
  0x16   :  { %258 = vperm.xlu0 %477, %v254_v33   ;;  %v136_v39 = vsel %vm116_vm0, %v66_v35, 0  ;;  %v65_v43 = vpack.c.bf16 %v37_v42, %v36_v41  ;;  %v51_v45 = vld [vmem:[%s715_s0 + $0xa8] sm:$0xff]  ;;  %v34_v48 = vld [vmem:[%s715_s0 + $0x20] sm:$0xff]  ;;  %v48_v51 = vld [vmem:[%s715_s0 + $0x90] sm:$0xff] }
  0x17   :  { %263 = vperm.xlu1 %478, %v255_v34   ;;  %v72_v47 = vpack.c.bf16 %v51_v45, %v50_v44  ;;  %v35_v49 = vld [vmem:[%s715_s0 + $0x28] sm:$0xff]  ;;  %v49_v52 = vld [vmem:[%s715_s0 + $0x98] sm:$0xff]  ;;  %v32_v55 = vld [vmem:[%s715_s0 + $0x10] sm:$0xff] }
  0x18   :  { %451 = vmatpush3.bf16.xpose.msra.mxu0 %v139_v29  ;;  %v133_v46 = vsel %vm116_vm0, %v65_v43, 0  ;;  %v64_v50 = vpack.c.bf16 %v35_v49, %v34_v48  ;;  %v71_v54 = vpack.c.bf16 %v49_v52, %v48_v51  ;;  %v33_v56 = vld [vmem:[%s715_s0 + $0x18] sm:$0xff]  ;;  %v46_v58 = vld [vmem:[%s715_s0 + $0x80] sm:$0xff]  ;;  %v47_v59 = vld [vmem:[%s715_s0 + $0x88] sm:$0xff] }
  0x19   :  { %469 = vmatprep.subr.msk.bf16.mxu0 %vm116_vm0, %v74_v30  ;;  %v63_v57 = vpack.c.bf16 %v33_v56, %v32_v55  ;;  %v70_v61 = vpack.c.bf16 %v47_v59, %v46_v58  ;;  %v30_v62 = vld [vmem:[%s715_s0] sm:$0xff]  ;;  %v31_v63 = vld [vmem:[%s715_s0 + $0x8] sm:$0xff] }
  0x1a   :  { %336 = vperm.xlu0 %477, %v333_v38   ;;  %v130_v53 = vsel %vm116_vm0, %v64_v50, 0  ;;  %v62_v0 = vpack.c.bf16 %v31_v63, %v30_v62  ;;  %v480_v2 = vld [vmem:[%s716_s1 + $0x8] sm:$0xff]   ;;  %v481_v44 = vld [vmem:[%s718_s3] sm:$0xff]  }
  0x1b   :  { %v127_v60 = vsel %vm116_vm0, %v63_v57, 0 }
  0x1c   :  { %v124_v1 = vsel %vm116_vm0, %v62_v0, 0  ;;  %v330_v0 = vld [vmem:[%s720_s5] sm:$0x1]  ;;  %s514_s5 = smov [#allocation3]  }
  0x1d   :  { %s429_s8 = sshll.u32 %s514_s5, 4  ;;  %s430_s8 = int_to_ptr.vmem [resolvable:$true] %s429_s8 }
  0x1e   :  { %s490_s9 = scalar_lea.vmem %s430_s8, 32  ;;  %p495_p1 = scmp.lt.s32.totalorder %s430_s8, %s430_s8 }
  0x1f   :  { %p491_p0 = scmp.ne.s32.totalorder %s430_s8, %s490_s9  ;;  %p496_p2 = scmp.lt.s32.totalorder %s490_s9, %s490_s9 }
  0x20   :  { %453 = vmatpush3.bf16.xpose.msra.mxu0 %v136_v39 }
  0x21   :  { %470 = vmatprep.subr.msk.bf16.mxu0 %vm116_vm0, %v73_v40  ;;  %p497_p3 = por %p496_p2, %p495_p1 }
  0x23   :  { %p498_p4 = pnand %p497_p3, %p491_p0 }
  0x28   :  { %455 = vmatpush3.bf16.xpose.msra.mxu0 %v133_v46 }
  0x29   :  { %471 = vmatprep.subr.msk.bf16.mxu0 %vm116_vm0, %v72_v47 }
  0x30   :  { %457 = vmatpush3.bf16.xpose.msra.mxu0 %v130_v53 }
  0x31   :  { %472 = vmatprep.subr.msk.bf16.mxu0 %vm116_vm0, %v71_v54 }
  0x38   :  { %459 = vmatpush3.bf16.xpose.msra.mxu0 %v127_v60 }
  0x39   :  { %473 = vmatprep.subr.msk.bf16.mxu0 %vm116_vm0, %v70_v61 }
  0x40   :  { %461 = vmatpush3.bf16.xpose.msra.mxu0 %v124_v1  ;;  %v339_v1 = vlaneseq }
  0x42   :  { %vm420_vm15 = vcmp.lt.s32.totalorder %v339_v1, 256 }
  0x47   :  { %463 = vmatmul.mubr.msk.bf16.vlgmr.msra.gmra.mxu0 %vm116_vm0, %v604_v21 }
  0x48   :  { %464 = vmatprep.mubr.msk.bf16.mxu0 %vm116_vm0, %v480_v2 }
  0x4f   :  { %465 = vmatmul.mubr.msk.bf16.gmra.mxu0 %vm116_vm0, %v480_v2  ;;  %v340_v2 = vshrl.u32 %v339_v1, 7 }
  0x83   :  { %v99_v7 = vpop.permute.xlu0 %98 }
  0x84   :  { %v89_v5 = vpop.permute.xlu1 %88 }
  0x8d   :  { %v104_v15 = vpop.permute.xlu0 %103 }
  0x8e   :  { %v94_v11 = vpop.permute.xlu1 %93 }
  0x91   :  { %v259_v46 = vpop.permute.xlu0 %258 }
  0x92   :  { %v264_v49 = vpop.permute.xlu1 %263 }
 0x107   :  { %v205_v3 = vpop.f32.mrf.mxu0 }
 0x108   :  { %v206_v26 = vadd.f32 %v205_v3, %v89_v5  ;;  %v341_v3 = vsub.s32 0, %v340_v2 }
 0x109   :  { %v207_v4 = vpop.f32.mrf.mxu0 }
 0x10a   :  { %v208_v18 = vadd.f32 %v207_v4, %v89_v5  ;;  %v232_v35 = vmul.f32 0.2, %v206_v26  ;;  %vm224_vm8 = vcmp.gt.f32.partialorder %v206_v26, 0.0  ;;  %v337_v4 = vpop.permute.xlu0 %336 }
 0x10b   :  { %v209_v6 = vpop.f32.mrf.mxu0  ;;  %v342_v5 = vrot.slane %v337_v4, %v341_v3 }
 0x10c   :  { %v210_v20 = vadd.f32 %v209_v6, %v94_v11  ;;  %v233_v28 = vmul.f32 0.2, %v208_v18  ;;  %vm225_vm6 = vcmp.gt.f32.partialorder %v208_v18, 0.0  ;;  %v240_v42 = vsel %vm224_vm8, %v206_v26, %v232_v35 }
 0x10d   :  { %v211_v9 = vpop.f32.mrf.mxu0 }
 0x10e   :  { %v212_v12 = vadd.f32 %v211_v9, %v94_v11  ;;  %v234_v30 = vmul.f32 0.2, %v210_v20  ;;  %vm226_vm7 = vcmp.gt.f32.partialorder %v210_v20, 0.0  ;;  %v241_v39 = vsel %vm225_vm6, %v208_v18, %v233_v28 }
 0x10f   :  { %v215_v10 = vpop.f32.mrf.mxu0 }
 0x110   :  { %v216_v16 = vadd.f32 %v215_v10, %v99_v7  ;;  %v235_v21 = vmul.f32 0.2, %v212_v12  ;;  %vm227_vm2 = vcmp.gt.f32.partialorder %v212_v12, 0.0  ;;  %v242_v41 = vsel %vm226_vm7, %v210_v20, %v234_v30 }
 0x111   :  { %v217_v13 = vpop.f32.mrf.mxu0  ;;  %v250_v43 = vpack.c.bf16 %v242_v41, %v240_v42 }
 0x112   :  { %v218_v14 = vadd.f32 %v217_v13, %v99_v7  ;;  %v236_v27 = vmul.f32 0.2, %v216_v16  ;;  %vm228_vm5 = vcmp.gt.f32.partialorder %v216_v16, 0.0  ;;  %v243_v34 = vsel %vm227_vm2, %v212_v12, %v235_v21 }
 0x113   :  { %v219_v17 = vpop.f32.mrf.mxu0  ;;  %v251_v40 = vpack.c.bf16 %v243_v34, %v241_v39 }
 0x114   :  { %v220_v19 = vadd.f32 %v219_v17, %v104_v15  ;;  %v237_v23 = vmul.f32 0.2, %v218_v14  ;;  %vm229_vm3 = vcmp.gt.f32.partialorder %v218_v14, 0.0  ;;  %v244_v37 = vsel %vm228_vm5, %v216_v16, %v236_v27 }
 0x115   :  { %v221_v22 = vpop.f32.mrf.mxu0 }
 0x116   :  { %v238_v24 = vmul.f32 0.2, %v220_v19  ;;  %v222_v25 = vadd.f32 %v221_v22, %v104_v15  ;;  %vm230_vm1 = vcmp.gt.f32.partialorder %v220_v19, 0.0  ;;  %v245_v32 = vsel %vm229_vm3, %v218_v14, %v237_v23 }
 0x118   :  { %v239_v29 = vmul.f32 0.2, %v222_v25  ;;  %vm231_vm4 = vcmp.gt.f32.partialorder %v222_v25, 0.0  ;;  %v246_v31 = vsel %vm230_vm1, %v220_v19, %v238_v24  ;;  %v513_v19 = vmov 1966171168  }
 0x119   :  { %v252_v38 = vpack.c.bf16 %v246_v31, %v244_v37  ;;  %v404_v20 = vunpack.c.l.s4 %v513_v19 }
 0x11a   :  { %v247_v33 = vsel %vm231_vm4, %v222_v25, %v239_v29 }
 0x11b   :  { %v253_v36 = vpack.c.bf16 %v247_v33, %v245_v32  ;;  %v405_v21 = vunpack.c.0.s8 %v404_v20 }
 0x11d   :  { %287 = vmatprep.subr.bf16.mxu1 %v253_v36  ;;  %v408_v23 = vsub.s32 %v405_v21, %v340_v2 }
 0x11e   :  { %288 = vmatpush1.bf16.msra.mxu1 %v252_v38 }
 0x11f   :  { %289 = vmatprep.subr.bf16.mxu1 %v251_v40 }
 0x122   :  { %290 = vmatpush1.bf16.msra.mxu1 %v250_v43 }
 0x125   :  { %442 = vmatmul.mubr.msk.bf16.vlgmr.msra.gmra.mxu1 %vm271_vm9, %v481_v44 }
 0x126   :  { %379 = vmatprep.mubr.bf16.mxu1 %v512_v8 }
 0x1e5   :  { %v309_v45 = vpop.f32.mrf.mxu1 }
 0x1e6   :  { %v310_v50 = vadd.f32 %v309_v45, %v259_v46 }
 0x1e7   :  { %v311_v47 = vpop.f32.mrf.mxu1 }
 0x1e8   :  { %v312_v48 = vadd.f32 %v311_v47, %v259_v46  ;;  %v322_v57 = vmul.f32 0.2, %v310_v50  ;;  %vm318_vm12 = vcmp.gt.f32.partialorder %v310_v50, 0.0 }
 0x1e9   :  { %v313_v51 = vpop.f32.mrf.mxu1 }
 0x1ea   :  { %v314_v52 = vadd.f32 %v313_v51, %v264_v49  ;;  %v323_v54 = vmul.f32 0.2, %v312_v48  ;;  %vm319_vm11 = vcmp.gt.f32.partialorder %v312_v48, 0.0  ;;  %v326_v61 = vsel %vm318_vm12, %v310_v50, %v322_v57 }
 0x1eb   :  { %v315_v53 = vpop.f32.mrf.mxu1 }
 0x1ec   :  { %vm320_vm10 = vcmp.gt.f32.partialorder %v314_v52, 0.0  ;;  %v324_v55 = vmul.f32 0.2, %v314_v52  ;;  %v316_v56 = vadd.f32 %v315_v53, %v264_v49  ;;  %v327_v8 = vsel %vm319_vm11, %v312_v48, %v323_v54 }
 0x1ee   :  { %vm321_vm13 = vcmp.gt.f32.partialorder %v316_v56, 0.0  ;;  %v325_v58 = vmul.f32 0.2, %v316_v56  ;;  %v328_v59 = vsel %vm320_vm10, %v314_v52, %v324_v55 }
 0x1ef   :  { %v331_v63 = vpack.c.bf16 %v328_v59, %v326_v61 }
 0x1f0   :  { %v329_v60 = vsel %vm321_vm13, %v316_v56, %v325_v58 }
 0x1f1   :  { %v332_v62 = vpack.c.bf16 %v329_v60, %v327_v8 }
 0x1f3   :  { %361 = vmatprep.subr.bf16.mxu1 %v332_v62 }
 0x1f4   :  { %362 = vmatpush1.bf16.msra.mxu1 %v331_v63 }
 0x1f7   :  { %443 = vmatmul.mubr.msk.bf16.vlgmr.msra.gmra.mxu1 %vm343_vm14, %v330_v0 }
 0x2b7   :  { %v381_v6 = vpop.f32.mrf.mxu1 }
 0x2b8   :  { %v382_v7 = vadd.f32 %v381_v6, %v342_v5 }
 0x2b9   :  { %v383_v9 = vpop.f32.mrf.mxu1 }
 0x2ba   :  { %v444_v10 = vmul.f32 -1.442695, %v382_v7  ;;  %v384_v11 = vadd.f32 %v383_v9, %v342_v5 }
 0x2bb   :  { %v385_v12 = vpop.f32.mrf.mxu1 }
 0x2bc   :  { %482 = vpow2.f32 %v444_v10  ;;  %v445_v13 = vmul.f32 -1.442695, %v384_v11 }
 0x2bd   :  { %v386_v14 = vpop.f32.mrf.mxu1 }
 0x2be   :  { %484 = vpow2.f32 %v445_v13 }
 0x2c9   :  { %v483_v15 = vpop.eup %482 }
 0x2ca   :  { %v394_v16 = vadd.f32 1.0, %v483_v15 }
 0x2cb   :  { %v485_v17 = vpop.eup %484 }
 0x2cc   :  { %v395_v18 = vadd.f32 1.0, %v485_v17  ;;  %486 = vrcp.f32 %v394_v16 }
 0x2ce   :  { %488 = vrcp.f32 %v395_v18 }
 0x2d9   :  { %v487_v22 = vpop.eup %486 }
 0x2db   :  { %v489_v24 = vpop.eup %488 }
 0x2dc   :  { %v402_v25 = vcombine.low %v487_v22, %v489_v24 }
 0x2de   :  { %v409_v26 = vrot.slane %v402_v25, %v408_v23 }
 0x2e0   :  { %v416_v27 = vrot.slane %v409_v26, %v408_v23 }
 0x2e2   :  { %422 = vst.msk [vmem:[#allocation3] sm:$0x3] %vm420_vm15, %v416_v27 }
 0x2e3   :  { %501 = shalt.err (!%p498_p4)
}
 0x2e4   :  { %432 = dma.vmem_to_hbm [thread:$0]  %s430_s8, 32, %s722_s7, [#allocation4]  }
 0x2e5   :  { %510 = dma.done.wait [#allocation4], 32  }
 0x2e6   :  { %511 = vsyncadd [#allocation4], 4294967264 }
 0x2e7   :  { %436 = vsyncpa [#allocation4], 1 }

</bundles_post_ra>
